<compile_context>
chip_gen: v5e
topology: v5e:2x2
jax: 0.10.0
libtpu: 0.0.40
codegen_flags: <defaults>
</compile_context>

<pallas_src>
import functools

import jax
import jax.numpy as jnp
from jax.experimental import pallas as pl
from jax.experimental.pallas import tpu as pltpu


_CONV_STRIDES = (1, 2, 2, 2)


def _conv_out_len(L_in, K, stride):
    return (L_in - K) // stride + 1


def _elu(x):
    # ELU(alpha=1).  No clamp: the select discards the positive-branch exp, so
    # overflow in exp(large x) cannot leak into the result (and cannot NaN).
    return jnp.where(x > 0.0, x, jnp.exp(x) - 1.0)


# ---------------------------------------------------------------------------
# Fused kernel: conv1(ELU) -> conv2(ELU) -> conv3(ELU) -> conv4(ELU) -> fc
# One matmul per layer; activations stay lane-major 2-D in VMEM/vregs.
# ---------------------------------------------------------------------------
def _fused_onehot_cnn_kernel(x_ref,
                             w1_ref, b1_ref, w2_ref, b2_ref,
                             w3_ref, b3_ref, w4_ref, b4_ref,
                             wf_ref, bf_ref, o_ref, *, compute_dtype):
    """Per grid step (TB = batch tile):
       x_ref  : (TB, L0*C_in)    lane-major input
       w*_ref : (L_in*C, L_out*C) block-structured conv weights (pre-cast)
       b*_ref : (1, L_out*C)     position-tiled biases (f32)
       wf_ref : (NC, OUT), bf_ref: (1, OUT), o_ref: (TB, OUT)
    """
    h = x_ref[...].astype(compute_dtype)                      # cast once
    for w_ref, b_ref in ((w1_ref, b1_ref), (w2_ref, b2_ref),
                         (w3_ref, b3_ref), (w4_ref, b4_ref)):
        z = jnp.dot(h, w_ref[...],
                    preferred_element_type=jnp.float32) + b_ref[...]
        h = _elu(z).astype(compute_dtype)                     # (TB, L_out*NC)
    # Final conv length is exactly 1 (reference's .squeeze(dim=2)), so h is
    # already the (TB, NC) feature matrix.
    out = jnp.dot(h, wf_ref[...],
                  preferred_element_type=jnp.float32) + bf_ref[...]
    # TODO(synk): out lane dim is OUT=8 (<128) -> masked vst; fold batch into
    # lanes only if profiling ever shows writeback overhead (polish item).
    o_ref[...] = out.astype(o_ref.dtype)


# ---------------------------------------------------------------------------
# Batch-tile selection: big tiles to amortize per-step overhead, but keep an
# even number of >= 2 steps when the batch allows so v7x megacore can split
# the grid across both TensorCores.
# ---------------------------------------------------------------------------
def _pick_batch_tile(B):
    if B <= 8:
        return B, 1                       # tiny batch: one full-batch step
    steps = max(2, pl.cdiv(B, 512))       # cap tile at 512 rows
    if steps % 2:
        steps += 1                        # even step count -> balanced on 2 TCs
    tb = pl.cdiv(B, steps)
    tb = pl.cdiv(tb, 8) * 8               # sublane-aligned block
    return tb, pl.cdiv(B, tb)


# ---------------------------------------------------------------------------
# Wrapper: single pallas_call over a batch-tiled grid
# ---------------------------------------------------------------------------
@jax.jit
def onehot_cnn_forward(kparams, x_in):
    """x_in: (B, C_in, L) float32 (PyTorch NCL). Returns (B, output_dim) f32.
    Matches OneHotCNN.forward with apply_sigmoid=False."""
    B, C_in, L0 = x_in.shape
    in_dim = kparams["conv1_w"].shape[0]
    if in_dim != C_in * L0:
        raise ValueError(f"params prepared for input dim {in_dim}, "
                         f"got C_in*L = {C_in * L0}")
    output_dim = kparams["fc_b"].shape[1]
    compute_dtype = kparams["conv1_w"].dtype   # bf16 (default) or f32

    # NCL -> lane-major (B, L*C_in): lane index = position*C_in + channel.
    x_flat = jnp.transpose(x_in, (0, 2, 1)).reshape(B, L0 * C_in)

    TB, num_steps = _pick_batch_tile(B)

    def const_spec(a):                    # tiny weight/bias resident every step
        return pl.BlockSpec(a.shape, lambda i: (0, 0))

    in_specs = [
        pl.BlockSpec((TB, in_dim), lambda i: (i, 0)),
        const_spec(kparams["conv1_w"]), const_spec(kparams["conv1_b"]),
        const_spec(kparams["conv2_w"]), const_spec(kparams["conv2_b"]),
        const_spec(kparams["conv3_w"]), const_spec(kparams["conv3_b"]),
        const_spec(kparams["conv4_w"]), const_spec(kparams["conv4_b"]),
        const_spec(kparams["fc_w"]), const_spec(kparams["fc_b"]),
    ]
    out_specs = pl.BlockSpec((TB, output_dim), lambda i: (i, 0))

    kernel = functools.partial(_fused_onehot_cnn_kernel,
                               compute_dtype=compute_dtype)
    return pl.pallas_call(
        kernel,
        out_shape=jax.ShapeDtypeStruct((B, output_dim), jnp.float32),
        grid=(num_steps,),
        in_specs=in_specs,
        out_specs=out_specs,
        compiler_params=pltpu.CompilerParams(
            # v7x: 2 TCs split the (>=2-step) batch grid; per-step VMEM < 3 MiB
            # so no vmem_limit override is needed on any generation.
            dimension_semantics=("parallel",),
        ),
    )(x_flat,
      kparams["conv1_w"], kparams["conv1_b"],
      kparams["conv2_w"], kparams["conv2_b"],
      kparams["conv3_w"], kparams["conv3_b"],
      kparams["conv4_w"], kparams["conv4_b"],
      kparams["fc_w"], kparams["fc_b"])


# ---------------------------------------------------------------------------
# Parameter init (PyTorch layout, PyTorch-style U(-1/sqrt(fan_in), +...))
# ---------------------------------------------------------------------------
def init_params(key, initial_num_channels, output_dim, num_channels):
    layer_specs = [
        ("conv1", (num_channels, initial_num_channels, 5)),
        ("conv2", (num_channels, num_channels, 3)),
        ("conv3", (num_channels, num_channels, 3)),
        ("conv4", (num_channels, num_channels, 3)),
        ("fc", (output_dim, num_channels)),
    ]
    params = {}
    keys = jax.random.split(key, 2 * len(layer_specs))
    for i, (name, wshape) in enumerate(layer_specs):
        fan_in = 1
        for d in wshape[1:]:
            fan_in *= d
        bound = 1.0 / (fan_in ** 0.5)
        params[name + "_w"] = jax.random.uniform(
            keys[2 * i], wshape, jnp.float32, minval=-bound, maxval=bound)
        params[name + "_b"] = jax.random.uniform(
            keys[2 * i + 1], (wshape[0],), jnp.float32, minval=-bound, maxval=bound)
    return params


def prepare_params(params, input_length, compute_dtype=jnp.bfloat16):
    """ONE-TIME conversion to the fused-kernel layout (do NOT call per forward):
      * conv weight (C_out, C_in, K) -> block matrix (L_in*C_in, L_out*C_out)
        that folds the K taps and ALL output positions of the strided valid
        conv into a single matmul over lane-major activations;
      * conv bias (C_out,) -> position-tiled (1, L_out*C_out) f32;
      * fc weight (OUT, NC) -> (NC, OUT); fc bias -> (1, OUT) f32;
      * matmul weights pre-cast to compute_dtype (bf16 default)."""
    kp = {}
    L = input_length
    for i, stride in zip((1, 2, 3, 4), _CONV_STRIDES):
        w = params[f"conv{i}_w"]                      # (C_out, C_in, K)
        C_out, C_in, K = w.shape
        L_out = _conv_out_len(L, K, stride)
        if L_out < 1:
            raise ValueError(f"conv{i}: input length {L} too short for K={K}")
        w_flat = jnp.transpose(w, (2, 1, 0)).reshape(K * C_in, C_out)
        W = jnp.zeros((L * C_in, L_out * C_out), jnp.float32)
        for l in range(L_out):                        # L_out <= 16, host-side
            r0 = stride * l * C_in
            W = W.at[r0:r0 + K * C_in, l * C_out:(l + 1) * C_out].set(w_flat)
        kp[f"conv{i}_w"] = W.astype(compute_dtype)
        kp[f"conv{i}_b"] = jnp.tile(params[f"conv{i}_b"], L_out)[None, :]
        L = L_out
    if L != 1:
        raise ValueError(
            f"conv chain reduces input length {input_length} to {L}; "
            f"the reference's squeeze(dim=2) requires exactly 1")
    kp["fc_w"] = params["fc_w"].T.astype(compute_dtype)
    kp["fc_b"] = params["fc_b"][None, :]
    return kp


# ---------------------------------------------------------------------------
# Pure-JAX reference of the PyTorch forward (for correctness check only)
# ---------------------------------------------------------------------------
def _reference_forward(params, x_in):
    h = x_in
    for i, stride in zip((1, 2, 3, 4), _CONV_STRIDES):
        h = jax.lax.conv_general_dilated(
            h, params[f"conv{i}_w"], window_strides=(stride,), padding="VALID",
            dimension_numbers=("NCH", "OIH", "NCH"),
            precision=jax.lax.Precision.HIGHEST)
        h = h + params[f"conv{i}_b"][None, :, None]
        h = jax.nn.elu(h)
    feat = jnp.squeeze(h, axis=2)
    return jnp.dot(feat, params["fc_w"].T,
                   precision=jax.lax.Precision.HIGHEST) + params["fc_b"]


if __name__ == "__main__":
    # L=20 -> conv chain lengths 16 -> 7 -> 3 -> 1 (squeeze(dim=2) valid).
    B, C_IN, L = 2, 4, 20
    NUM_CHANNELS, OUTPUT_DIM = 32, 8

    key = jax.random.PRNGKey(0)
    pkey, xkey = jax.random.split(key)
    torch_layout_params = init_params(pkey, C_IN, OUTPUT_DIM, NUM_CHANNELS)
    x = jax.random.normal(xkey, (B, C_IN, L), jnp.float32)

    ref = _reference_forward(torch_layout_params, x)

    # f32 compute path: exactness check against the pure-JAX reference.
    kp_f32 = prepare_params(torch_layout_params, input_length=L,
                            compute_dtype=jnp.float32)
    out_f32 = jax.block_until_ready(onehot_cnn_forward(kp_f32, x))
    assert out_f32.shape == (B, OUTPUT_DIM), out_f32.shape
    err_f32 = float(jnp.max(jnp.abs(out_f32 - ref)))
    assert err_f32 < 1e-3, f"f32 path max abs err vs reference: {err_f32}"

    # bf16 compute path (default; full-rate MXU, f32 accumulation).
    kp_bf16 = prepare_params(torch_layout_params, input_length=L)
    out_bf16 = jax.block_until_ready(onehot_cnn_forward(kp_bf16, x))
    err_bf16 = float(jnp.max(jnp.abs(out_bf16 - ref)))
    assert err_bf16 < 5e-2, f"bf16 path max abs err vs reference: {err_bf16}"

    # TODO(synk): apply_sigmoid=True calls F.sigmout (undefined in PyTorch);
    # only the default apply_sigmoid=False path is implemented.
    print("KERNEL_OK")
</pallas_src>

<mosaic_0001>
module attributes {stable_mosaic.version = 11 : i64} {
  func.func @_fused_onehot_cnn_kernel(%arg0: i32, %arg1: memref<2x80xf32, #tpu.memory_space<vmem>>, %arg2: memref<80x512xf32, #tpu.memory_space<vmem>>, %arg3: memref<1x512xf32, #tpu.memory_space<vmem>>, %arg4: memref<512x224xf32, #tpu.memory_space<vmem>>, %arg5: memref<1x224xf32, #tpu.memory_space<vmem>>, %arg6: memref<224x96xf32, #tpu.memory_space<vmem>>, %arg7: memref<1x96xf32, #tpu.memory_space<vmem>>, %arg8: memref<96x32xf32, #tpu.memory_space<vmem>>, %arg9: memref<1x32xf32, #tpu.memory_space<vmem>>, %arg10: memref<32x8xf32, #tpu.memory_space<vmem>>, %arg11: memref<1x8xf32, #tpu.memory_space<vmem>>, %arg12: memref<2x8xf32, #tpu.memory_space<vmem>>) attributes {dimension_semantics = [#tpu.dimension_semantics<parallel>], iteration_bounds = array<i64: 1>, scalar_prefetch = 0 : i64, scratch_operands = 0 : i64, tpu.core_type = #tpu.core_type<tc>, window_params = [{transform_indices = @transform_0, window_bounds = array<i64: 2, 80>}, {pipeline_mode = #tpu.pipeline_mode<synchronous>, transform_indices = @transform_1, window_bounds = array<i64: 80, 512>}, {pipeline_mode = #tpu.pipeline_mode<synchronous>, transform_indices = @transform_2, window_bounds = array<i64: 1, 512>}, {pipeline_mode = #tpu.pipeline_mode<synchronous>, transform_indices = @transform_3, window_bounds = array<i64: 512, 224>}, {pipeline_mode = #tpu.pipeline_mode<synchronous>, transform_indices = @transform_4, window_bounds = array<i64: 1, 224>}, {pipeline_mode = #tpu.pipeline_mode<synchronous>, transform_indices = @transform_5, window_bounds = array<i64: 224, 96>}, {pipeline_mode = #tpu.pipeline_mode<synchronous>, transform_indices = @transform_6, window_bounds = array<i64: 1, 96>}, {pipeline_mode = #tpu.pipeline_mode<synchronous>, transform_indices = @transform_7, window_bounds = array<i64: 96, 32>}, {pipeline_mode = #tpu.pipeline_mode<synchronous>, transform_indices = @transform_8, window_bounds = array<i64: 1, 32>}, {pipeline_mode = #tpu.pipeline_mode<synchronous>, transform_indices = @transform_9, window_bounds = array<i64: 32, 8>}, {pipeline_mode = #tpu.pipeline_mode<synchronous>, transform_indices = @transform_10, window_bounds = array<i64: 1, 8>}, {transform_indices = @transform_11, window_bounds = array<i64: 2, 8>}]} {
    %c0 = arith.constant 0 : index
    %c0_0 = arith.constant 0 : index
    %0 = vector.load %arg1[%c0, %c0_0] : memref<2x80xf32, #tpu.memory_space<vmem>>, vector<2x80xf32>
    %c0_1 = arith.constant 0 : index
    %c0_2 = arith.constant 0 : index
    %1 = vector.load %arg2[%c0_1, %c0_2] : memref<80x512xf32, #tpu.memory_space<vmem>>, vector<80x512xf32>
    %cst = arith.constant dense<0.000000e+00> : vector<2x512xf32>
    %2 = tpu.matmul %0, %1, %cst {dimension_numbers = #tpu.dot_dimension_numbers<[1], [0], [0], [1], [0, 0, 1, 1], [], []>} : vector<2x80xf32>, vector<80x512xf32>, vector<2x512xf32> -> vector<2x512xf32>
    %c0_3 = arith.constant 0 : index
    %c0_4 = arith.constant 0 : index
    %3 = vector.load %arg3[%c0_3, %c0_4] : memref<1x512xf32, #tpu.memory_space<vmem>>, vector<1x512xf32>
    %4 = vector.broadcast %3 : vector<1x512xf32> to vector<2x512xf32>
    %5 = arith.addf %2, %4 : vector<2x512xf32>
    %cst_5 = arith.constant 0.000000e+00 : f32
    %6 = vector.broadcast %cst_5 : f32 to vector<2x512xf32>
    %7 = arith.cmpf ogt, %5, %6 : vector<2x512xf32>
    %8 = math.exp %5 : vector<2x512xf32>
    %cst_6 = arith.constant 1.000000e+00 : f32
    %9 = vector.broadcast %cst_6 : f32 to vector<2x512xf32>
    %10 = arith.subf %8, %9 : vector<2x512xf32>
    %11 = arith.select %7, %5, %10 : vector<2x512xi1>, vector<2x512xf32>
    %c0_7 = arith.constant 0 : index
    %c0_8 = arith.constant 0 : index
    %12 = vector.load %arg4[%c0_7, %c0_8] : memref<512x224xf32, #tpu.memory_space<vmem>>, vector<512x224xf32>
    %cst_9 = arith.constant dense<0.000000e+00> : vector<2x224xf32>
    %13 = tpu.matmul %11, %12, %cst_9 {dimension_numbers = #tpu.dot_dimension_numbers<[1], [0], [0], [1], [0, 0, 1, 1], [], []>} : vector<2x512xf32>, vector<512x224xf32>, vector<2x224xf32> -> vector<2x224xf32>
    %c0_10 = arith.constant 0 : index
    %c0_11 = arith.constant 0 : index
    %14 = vector.load %arg5[%c0_10, %c0_11] : memref<1x224xf32, #tpu.memory_space<vmem>>, vector<1x224xf32>
    %15 = vector.broadcast %14 : vector<1x224xf32> to vector<2x224xf32>
    %16 = arith.addf %13, %15 : vector<2x224xf32>
    %cst_12 = arith.constant 0.000000e+00 : f32
    %17 = vector.broadcast %cst_12 : f32 to vector<2x224xf32>
    %18 = arith.cmpf ogt, %16, %17 : vector<2x224xf32>
    %19 = math.exp %16 : vector<2x224xf32>
    %cst_13 = arith.constant 1.000000e+00 : f32
    %20 = vector.broadcast %cst_13 : f32 to vector<2x224xf32>
    %21 = arith.subf %19, %20 : vector<2x224xf32>
    %22 = arith.select %18, %16, %21 : vector<2x224xi1>, vector<2x224xf32>
    %c0_14 = arith.constant 0 : index
    %c0_15 = arith.constant 0 : index
    %23 = vector.load %arg6[%c0_14, %c0_15] : memref<224x96xf32, #tpu.memory_space<vmem>>, vector<224x96xf32>
    %cst_16 = arith.constant dense<0.000000e+00> : vector<2x96xf32>
    %24 = tpu.matmul %22, %23, %cst_16 {dimension_numbers = #tpu.dot_dimension_numbers<[1], [0], [0], [1], [0, 0, 1, 1], [], []>} : vector<2x224xf32>, vector<224x96xf32>, vector<2x96xf32> -> vector<2x96xf32>
    %c0_17 = arith.constant 0 : index
    %c0_18 = arith.constant 0 : index
    %25 = vector.load %arg7[%c0_17, %c0_18] : memref<1x96xf32, #tpu.memory_space<vmem>>, vector<1x96xf32>
    %26 = vector.broadcast %25 : vector<1x96xf32> to vector<2x96xf32>
    %27 = arith.addf %24, %26 : vector<2x96xf32>
    %cst_19 = arith.constant 0.000000e+00 : f32
    %28 = vector.broadcast %cst_19 : f32 to vector<2x96xf32>
    %29 = arith.cmpf ogt, %27, %28 : vector<2x96xf32>
    %30 = math.exp %27 : vector<2x96xf32>
    %cst_20 = arith.constant 1.000000e+00 : f32
    %31 = vector.broadcast %cst_20 : f32 to vector<2x96xf32>
    %32 = arith.subf %30, %31 : vector<2x96xf32>
    %33 = arith.select %29, %27, %32 : vector<2x96xi1>, vector<2x96xf32>
    %c0_21 = arith.constant 0 : index
    %c0_22 = arith.constant 0 : index
    %34 = vector.load %arg8[%c0_21, %c0_22] : memref<96x32xf32, #tpu.memory_space<vmem>>, vector<96x32xf32>
    %cst_23 = arith.constant dense<0.000000e+00> : vector<2x32xf32>
    %35 = tpu.matmul %33, %34, %cst_23 {dimension_numbers = #tpu.dot_dimension_numbers<[1], [0], [0], [1], [0, 0, 1, 1], [], []>} : vector<2x96xf32>, vector<96x32xf32>, vector<2x32xf32> -> vector<2x32xf32>
    %c0_24 = arith.constant 0 : index
    %c0_25 = arith.constant 0 : index
    %36 = vector.load %arg9[%c0_24, %c0_25] : memref<1x32xf32, #tpu.memory_space<vmem>>, vector<1x32xf32>
    %37 = vector.broadcast %36 : vector<1x32xf32> to vector<2x32xf32>
    %38 = arith.addf %35, %37 : vector<2x32xf32>
    %cst_26 = arith.constant 0.000000e+00 : f32
    %39 = vector.broadcast %cst_26 : f32 to vector<2x32xf32>
    %40 = arith.cmpf ogt, %38, %39 : vector<2x32xf32>
    %41 = math.exp %38 : vector<2x32xf32>
    %cst_27 = arith.constant 1.000000e+00 : f32
    %42 = vector.broadcast %cst_27 : f32 to vector<2x32xf32>
    %43 = arith.subf %41, %42 : vector<2x32xf32>
    %44 = arith.select %40, %38, %43 : vector<2x32xi1>, vector<2x32xf32>
    %c0_28 = arith.constant 0 : index
    %c0_29 = arith.constant 0 : index
    %45 = vector.load %arg10[%c0_28, %c0_29] : memref<32x8xf32, #tpu.memory_space<vmem>>, vector<32x8xf32>
    %cst_30 = arith.constant dense<0.000000e+00> : vector<2x8xf32>
    %46 = tpu.matmul %44, %45, %cst_30 {dimension_numbers = #tpu.dot_dimension_numbers<[1], [0], [0], [1], [0, 0, 1, 1], [], []>} : vector<2x32xf32>, vector<32x8xf32>, vector<2x8xf32> -> vector<2x8xf32>
    %c0_31 = arith.constant 0 : index
    %c0_32 = arith.constant 0 : index
    %47 = vector.load %arg11[%c0_31, %c0_32] : memref<1x8xf32, #tpu.memory_space<vmem>>, vector<1x8xf32>
    %48 = vector.broadcast %47 : vector<1x8xf32> to vector<2x8xf32>
    %49 = arith.addf %46, %48 : vector<2x8xf32>
    %c0_33 = arith.constant 0 : index
    %c0_34 = arith.constant 0 : index
    %50 = vector.load %arg12[%c0_33, %c0_34] : memref<2x8xf32, #tpu.memory_space<vmem>>, vector<2x8xf32>
    tpu.vector_store %arg12[%c0_33, %c0_34], %49 {strides = array<i32>} : memref<2x8xf32, #tpu.memory_space<vmem>>, vector<2x8xf32>,
    return
  }
  func.func @transform_0(%arg0: i32) -> (i32, i32) {
    %c0_i32 = arith.constant 0 : i32
    %c0_i32_0 = arith.constant 0 : i32
    return %arg0, %c0_i32 : i32, i32
  }
  func.func @transform_1(%arg0: i32) -> (i32, i32) {
    %c0_i32 = arith.constant 0 : i32
    %c0_i32_0 = arith.constant 0 : i32
    %c0_i32_1 = arith.constant 0 : i32
    return %c0_i32, %c0_i32_0 : i32, i32
  }
  func.func @transform_2(%arg0: i32) -> (i32, i32) {
    %c0_i32 = arith.constant 0 : i32
    %c0_i32_0 = arith.constant 0 : i32
    %c0_i32_1 = arith.constant 0 : i32
    return %c0_i32, %c0_i32_0 : i32, i32
  }
  func.func @transform_3(%arg0: i32) -> (i32, i32) {
    %c0_i32 = arith.constant 0 : i32
    %c0_i32_0 = arith.constant 0 : i32
    %c0_i32_1 = arith.constant 0 : i32
    return %c0_i32, %c0_i32_0 : i32, i32
  }
  func.func @transform_4(%arg0: i32) -> (i32, i32) {
    %c0_i32 = arith.constant 0 : i32
    %c0_i32_0 = arith.constant 0 : i32
    %c0_i32_1 = arith.constant 0 : i32
    return %c0_i32, %c0_i32_0 : i32, i32
  }
  func.func @transform_5(%arg0: i32) -> (i32, i32) {
    %c0_i32 = arith.constant 0 : i32
    %c0_i32_0 = arith.constant 0 : i32
    %c0_i32_1 = arith.constant 0 : i32
    return %c0_i32, %c0_i32_0 : i32, i32
  }
  func.func @transform_6(%arg0: i32) -> (i32, i32) {
    %c0_i32 = arith.constant 0 : i32
    %c0_i32_0 = arith.constant 0 : i32
    %c0_i32_1 = arith.constant 0 : i32
    return %c0_i32, %c0_i32_0 : i32, i32
  }
  func.func @transform_7(%arg0: i32) -> (i32, i32) {
    %c0_i32 = arith.constant 0 : i32
    %c0_i32_0 = arith.constant 0 : i32
    %c0_i32_1 = arith.constant 0 : i32
    return %c0_i32, %c0_i32_0 : i32, i32
  }
  func.func @transform_8(%arg0: i32) -> (i32, i32) {
    %c0_i32 = arith.constant 0 : i32
    %c0_i32_0 = arith.constant 0 : i32
    %c0_i32_1 = arith.constant 0 : i32
    return %c0_i32, %c0_i32_0 : i32, i32
  }
  func.func @transform_9(%arg0: i32) -> (i32, i32) {
    %c0_i32 = arith.constant 0 : i32
    %c0_i32_0 = arith.constant 0 : i32
    %c0_i32_1 = arith.constant 0 : i32
    return %c0_i32, %c0_i32_0 : i32, i32
  }
  func.func @transform_10(%arg0: i32) -> (i32, i32) {
    %c0_i32 = arith.constant 0 : i32
    %c0_i32_0 = arith.constant 0 : i32
    %c0_i32_1 = arith.constant 0 : i32
    return %c0_i32, %c0_i32_0 : i32, i32
  }
  func.func @transform_11(%arg0: i32) -> (i32, i32) {
    %c0_i32 = arith.constant 0 : i32
    %c0_i32_0 = arith.constant 0 : i32
    return %arg0, %c0_i32 : i32, i32
  }
}

</mosaic_0001>

<bundles_post_ra>
// kernel: onehot_cnn_forward.1
= control target key start
LH: loop header
LB: loop body
LE: loop exit
PB: predicated region body
PF: predicated region fallthrough
CT: control target
= control target key end

     0   :  { %vm90_vm0 = vcmask 654336   ;;  %s1464_s0 = inlined_call_operand.vmem [shape: f32[2,80], index: 0, kind: input, shape index: {}]   ;;  %s1465_s1 = inlined_call_operand.vmem [shape: f32[80,512], index: 1, kind: input, shape index: {}]   ;;  %s1466_s2 = inlined_call_operand.vmem [shape: f32[1,512], index: 2, kind: input, shape index: {}]   ;;  %s1467_s3 = inlined_call_operand.vmem [shape: f32[512,224], index: 3, kind: input, shape index: {}]   ;;  %s1468_s4 = inlined_call_operand.vmem [shape: f32[1,224], index: 4, kind: input, shape index: {}]   ;;  %s1469_s5 = inlined_call_operand.vmem [shape: f32[224,96], index: 5, kind: input, shape index: {}]   ;;  %s1470_s6 = inlined_call_operand.vmem [shape: f32[1,96], index: 6, kind: input, shape index: {}]   ;;  %s1471_s7 = inlined_call_operand.vmem [shape: f32[96,32], index: 7, kind: input, shape index: {}]   ;;  %s1472_s8 = inlined_call_operand.vmem [shape: f32[1,32], index: 8, kind: input, shape index: {}]   ;;  %s1473_s9 = inlined_call_operand.vmem [shape: f32[32,8], index: 9, kind: input, shape index: {}]   ;;  %s1474_s10 = inlined_call_operand.vmem [shape: f32[1,8], index: 10, kind: input, shape index: {}]   ;;  %s1475_s11 = inlined_call_operand.hbm [shape: f32[2,8], index: 11, kind: output, shape index: {}]  }
   0x1   :  { %v76_v0 = vld [vmem:[%s1465_s1 + $0x120] sm:$0xff]  ;;  %v78_v1 = vld [vmem:[%s1465_s1 + $0x130] sm:$0xff]  ;;  %v77_v6 = vld [vmem:[%s1465_s1 + $0x128] sm:$0xff] }
   0x2   :  { %v72_v2 = vld [vmem:[%s1465_s1 + $0x100] sm:$0xff]  ;;  %100 = vmatpush.msra.mxu3 %v76_v0  ;;  %140 = vmatpush.msra.mxu2 %v78_v1  ;;  %v74_v3 = vld [vmem:[%s1465_s1 + $0x110] sm:$0xff]  ;;  %v73_v9 = vld [vmem:[%s1465_s1 + $0x108] sm:$0xff] }
   0x3   :  { %v68_v4 = vld [vmem:[%s1465_s1 + $0xe0] sm:$0xff]  ;;  %v70_v5 = vld [vmem:[%s1465_s1 + $0xf0] sm:$0xff]  ;;  %120 = vmatpush.msra.mxu1 %v77_v6  ;;  %v69_v10 = vld [vmem:[%s1465_s1 + $0xe8] sm:$0xff] }
   0x4   :  { %101 = vmatpush.msra.mxu3 %v72_v2  ;;  %141 = vmatpush.msra.mxu2 %v74_v3  ;;  %v64_v7 = vld [vmem:[%s1465_s1 + $0xc0] sm:$0xff]  ;;  %v66_v8 = vld [vmem:[%s1465_s1 + $0xd0] sm:$0xff]  ;;  %v65_v13 = vld [vmem:[%s1465_s1 + $0xc8] sm:$0xff] }
   0x5   :  { %v60_v11 = vld [vmem:[%s1465_s1 + $0xa0] sm:$0xff]  ;;  %v62_v12 = vld [vmem:[%s1465_s1 + $0xb0] sm:$0xff]  ;;  %121 = vmatpush.msra.mxu1 %v73_v9  ;;  %v61_v16 = vld [vmem:[%s1465_s1 + $0xa8] sm:$0xff] }
   0x6   :  { %102 = vmatpush.msra.mxu3 %v68_v4  ;;  %142 = vmatpush.msra.mxu2 %v70_v5  ;;  %v56_v14 = vld [vmem:[%s1465_s1 + $0x80] sm:$0xff]  ;;  %v58_v15 = vld [vmem:[%s1465_s1 + $0x90] sm:$0xff]  ;;  %v57_v19 = vld [vmem:[%s1465_s1 + $0x88] sm:$0xff] }
   0x7   :  { %122 = vmatpush.msra.mxu1 %v69_v10  ;;  %v52_v17 = vld [vmem:[%s1465_s1 + $0x60] sm:$0xff]  ;;  %v54_v18 = vld [vmem:[%s1465_s1 + $0x70] sm:$0xff]  ;;  %v53_v22 = vld [vmem:[%s1465_s1 + $0x68] sm:$0xff] }
   0x8   :  { %103 = vmatpush.msra.mxu3 %v64_v7  ;;  %143 = vmatpush.msra.mxu2 %v66_v8  ;;  %v48_v20 = vld [vmem:[%s1465_s1 + $0x40] sm:$0xff]  ;;  %v50_v21 = vld [vmem:[%s1465_s1 + $0x50] sm:$0xff]  ;;  %v49_v27 = vld [vmem:[%s1465_s1 + $0x48] sm:$0xff] }
   0x9   :  { %123 = vmatpush.msra.mxu1 %v65_v13  ;;  %v224_v23 = vld [vmem:[%s1467_s3 + $0xf0] sm:$0xff]  ;;  %v44_v24 = vld [vmem:[%s1465_s1 + $0x20] sm:$0xff]  ;;  %v79_v32 = vld [vmem:[%s1465_s1 + $0x138] sm:$0xff] }
   0xa   :  { %104 = vmatpush.msra.mxu3 %v60_v11  ;;  %144 = vmatpush.msra.mxu2 %v62_v12  ;;  %v46_v25 = vld [vmem:[%s1465_s1 + $0x30] sm:$0xff]  ;;  %v222_v26 = vld [vmem:[%s1467_s3 + $0xe0] sm:$0xff]  ;;  %v45_v33 = vld [vmem:[%s1465_s1 + $0x28] sm:$0xff] }
   0xb   :  { %124 = vmatpush.msra.mxu1 %v61_v16  ;;  %328 = vmatpush.msra.mxu0 %v224_v23  ;;  %v220_v28 = vld [vmem:[%s1467_s3 + $0xd0] sm:$0xff]  ;;  %v40_v29 = vld [vmem:[%s1465_s1] sm:$0xff]  ;;  %v75_v36 = vld [vmem:[%s1465_s1 + $0x118] sm:$0xff] }
   0xc   :  { %105 = vmatpush.msra.mxu3 %v56_v14  ;;  %145 = vmatpush.msra.mxu2 %v58_v15  ;;  %v42_v30 = vld [vmem:[%s1465_s1 + $0x10] sm:$0xff]  ;;  %v891_v31 = vld [vmem:[%s1464_s0] sm:$0x3]  ;;  %v41_v37 = vld [vmem:[%s1465_s1 + $0x8] sm:$0xff] }
   0xd   :  { %125 = vmatpush.msra.mxu1 %v57_v19  ;;  %329 = vmatpush.msra.mxu0 %v222_v26  ;;  %v288_v34 = vld [vmem:[%s1467_s3 + $0x2f0] sm:$0xff]  ;;  %v218_v35 = vld [vmem:[%s1467_s3 + $0xc0] sm:$0xff]  ;;  %v71_v39 = vld [vmem:[%s1465_s1 + $0xf8] sm:$0xff] }
   0xe   :  { %106 = vmatpush.msra.mxu3 %v52_v17  ;;  %146 = vmatpush.msra.mxu2 %v54_v18  ;;  %v286_v38 = vld [vmem:[%s1467_s3 + $0x2e0] sm:$0xff]  ;;  %v256_v40 = vld [vmem:[%s1467_s3 + $0x1f0] sm:$0xff]  ;;  %v67_v43 = vld [vmem:[%s1465_s1 + $0xd8] sm:$0xff] }
   0xf   :  { %126 = vmatpush.msra.mxu1 %v53_v22  ;;  %330 = vmatpush.msra.mxu0 %v220_v28  ;;  %v284_v41 = vld [vmem:[%s1467_s3 + $0x2d0] sm:$0xff]  ;;  %v254_v44 = vld [vmem:[%s1467_s3 + $0x1e0] sm:$0xff]  ;;  %v63_v47 = vld [vmem:[%s1465_s1 + $0xb8] sm:$0xff] }
  0x10   :  { %107 = vmatpush.msra.mxu3 %v48_v20  ;;  %147 = vmatpush.msra.mxu2 %v50_v21  ;;  %v216_v42 = vld [vmem:[%s1467_s3 + $0xb0] sm:$0xff]  ;;  %v282_v45 = vld [vmem:[%s1467_s3 + $0x2c0] sm:$0xff]  ;;  %v59_v51 = vld [vmem:[%s1465_s1 + $0x98] sm:$0xff] }
  0x11   :  { %127 = vmatpush.msra.mxu1 %v49_v27  ;;  %331 = vmatpush.msra.mxu0 %v218_v35  ;;  %v214_v46 = vld [vmem:[%s1467_s3 + $0xa0] sm:$0xff]  ;;  %v252_v48 = vld [vmem:[%s1467_s3 + $0x1d0] sm:$0xff]  ;;  %v55_v55 = vld [vmem:[%s1465_s1 + $0x78] sm:$0xff] }
  0x12   :  { %108 = vmatpush.msra.mxu3 %v44_v24  ;;  %148 = vmatpush.msra.mxu2 %v46_v25  ;;  %v280_v49 = vld [vmem:[%s1467_s3 + $0x2b0] sm:$0xff]  ;;  %v250_v52 = vld [vmem:[%s1467_s3 + $0x1c0] sm:$0xff]  ;;  %v51_v59 = vld [vmem:[%s1465_s1 + $0x58] sm:$0xff] }
  0x13   :  { %128 = vmatpush.msra.mxu1 %v45_v33  ;;  %332 = vmatpush.msra.mxu0 %v216_v42  ;;  %v212_v50 = vld [vmem:[%s1467_s3 + $0x90] sm:$0xff]  ;;  %v278_v53 = vld [vmem:[%s1467_s3 + $0x2a0] sm:$0xff]  ;;  %v47_v63 = vld [vmem:[%s1465_s1 + $0x38] sm:$0xff] }
  0x14   :  { %109 = vmatpush.msra.mxu3 %v40_v29  ;;  %149 = vmatpush.msra.mxu2 %v42_v30  ;;  %v210_v54 = vld [vmem:[%s1467_s3 + $0x80] sm:$0xff]  ;;  %v248_v56 = vld [vmem:[%s1467_s3 + $0x1b0] sm:$0xff]  ;;  %v43_v3 = vld [vmem:[%s1465_s1 + $0x18] sm:$0xff] }
  0x15   :  { %673 = vmatmul.msk.f32.vlgmr.msra.gmra.mxu3 %vm90_vm0, %v891_v31  ;;  %675 = vmatmul.msk.f32.vlgmr.msra.gmra.mxu2 %vm90_vm0, %v891_v31  ;;  %v276_v57 = vld [vmem:[%s1467_s3 + $0x290] sm:$0xff]  ;;  %v246_v60 = vld [vmem:[%s1467_s3 + $0x1a0] sm:$0xff] }
  0x16   :  { %160 = vmatpush.msrb.mxu3 %v79_v32  ;;  %368 = vmatpush.msrb.mxu2 %v288_v34  ;;  %v208_v58 = vld [vmem:[%s1467_s3 + $0x70] sm:$0xff]  ;;  %v274_v61 = vld [vmem:[%s1467_s3 + $0x280] sm:$0xff] }
  0x17   :  { %129 = vmatpush.msra.mxu1 %v41_v37  ;;  %333 = vmatpush.msra.mxu0 %v214_v46  ;;  %v206_v62 = vld [vmem:[%s1467_s3 + $0x60] sm:$0xff]  ;;  %v244_v0 = vld [vmem:[%s1467_s3 + $0x190] sm:$0xff] }
  0x18   :  { %161 = vmatpush.msrb.mxu3 %v75_v36  ;;  %674 = vmatmul.msk.f32.vlgmr.msra.gmra.mxu1 %vm90_vm0, %v891_v31  ;;  %v272_v1 = vld [vmem:[%s1467_s3 + $0x270] sm:$0xff]  ;;  %v242_v4 = vld [vmem:[%s1467_s3 + $0x180] sm:$0xff] }
  0x19   :  { %369 = vmatpush.msrb.mxu2 %v286_v38  ;;  %348 = vmatpush.msrb.mxu1 %v256_v40  ;;  %v204_v2 = vld [vmem:[%s1467_s3 + $0x50] sm:$0xff]  ;;  %v270_v6 = vld [vmem:[%s1467_s3 + $0x260] sm:$0xff] }
  0x1a   :  { %162 = vmatpush.msrb.mxu3 %v71_v39  ;;  %334 = vmatpush.msra.mxu0 %v212_v50  ;;  %v240_v5 = vld [vmem:[%s1467_s3 + $0x170] sm:$0xff] }
  0x1b   :  { %370 = vmatpush.msrb.mxu2 %v284_v41  ;;  %349 = vmatpush.msrb.mxu1 %v254_v44  ;;  %v320_v7 = vld [vmem:[%s1467_s3 + $0x3f0] sm:$0xff] }
  0x1c   :  { %163 = vmatpush.msrb.mxu3 %v67_v43  ;;  %335 = vmatpush.msra.mxu0 %v210_v54 }
  0x1d   :  { %371 = vmatpush.msrb.mxu2 %v282_v45  ;;  %350 = vmatpush.msrb.mxu1 %v252_v48 }
  0x1e   :  { %164 = vmatpush.msrb.mxu3 %v63_v47  ;;  %336 = vmatpush.msra.mxu0 %v208_v58 }
  0x1f   :  { %372 = vmatpush.msrb.mxu2 %v280_v49  ;;  %351 = vmatpush.msrb.mxu1 %v250_v52 }
  0x20   :  { %165 = vmatpush.msrb.mxu3 %v59_v51  ;;  %337 = vmatpush.msra.mxu0 %v206_v62 }
  0x21   :  { %373 = vmatpush.msrb.mxu2 %v278_v53  ;;  %352 = vmatpush.msrb.mxu1 %v248_v56 }
  0x22   :  { %166 = vmatpush.msrb.mxu3 %v55_v55  ;;  %338 = vmatpush.msra.mxu0 %v204_v2 }
  0x23   :  { %374 = vmatpush.msrb.mxu2 %v276_v57  ;;  %353 = vmatpush.msrb.mxu1 %v246_v60 }
  0x24   :  { %167 = vmatpush.msrb.mxu3 %v51_v59 }
  0x25   :  { %375 = vmatpush.msrb.mxu2 %v274_v61  ;;  %354 = vmatpush.msrb.mxu1 %v244_v0 }
  0x26   :  { %168 = vmatpush.msrb.mxu3 %v47_v63 }
  0x27   :  { %376 = vmatpush.msrb.mxu2 %v272_v1 }
  0x28   :  { %16 = vsyncpa [#allocation3], 0  ;;  %169 = vmatpush.msrb.mxu3 %v43_v3  ;;  %355 = vmatpush.msrb.mxu1 %v242_v4  ;;  %v268_v8 = vld [vmem:[%s1467_s3 + $0x250] sm:$0xff]  ;;  %v202_v9 = vld [vmem:[%s1467_s3 + $0x40] sm:$0xff]  ;;  %vm530_vm6 = vcmask 785408   ;;  %vm631_vm9 = vcmask 261120  }
  0x29   :  { %676 = vmatmul.msk.f32.vlgmr.msrb.gmra.mxu3 %vm90_vm0, %v891_v31  ;;  %377 = vmatpush.msrb.mxu2 %v270_v6  ;;  %v238_v10 = vld [vmem:[%s1467_s3 + $0x160] sm:$0xff]  ;;  %v200_v13 = vld [vmem:[%s1467_s3 + $0x30] sm:$0xff]  ;;  %v225_v29 = vld [vmem:[%s1467_s3 + $0xf8] sm:$0xff]  ;;  %vm655_vm11 = vcmask 58368  }
  0x2a   :  { %v318_v11 = vld [vmem:[%s1467_s3 + $0x3e0] sm:$0xff]  ;;  %356 = vmatpush.msrb.mxu1 %v240_v5  ;;  %388 = vmatpush.msra.mxu3 %v320_v7  ;;  %v236_v14 = vld [vmem:[%s1467_s3 + $0x150] sm:$0xff]  ;;  %v289_v32 = vld [vmem:[%s1467_s3 + $0x2f8] sm:$0xff] }
  0x2b   :  { %v266_v12 = vld [vmem:[%s1467_s3 + $0x240] sm:$0xff]  ;;  %378 = vmatpush.msrb.mxu2 %v268_v8  ;;  %339 = vmatpush.msra.mxu0 %v202_v9  ;;  %v316_v15 = vld [vmem:[%s1467_s3 + $0x3d0] sm:$0xff]  ;;  %v223_v33 = vld [vmem:[%s1467_s3 + $0xe8] sm:$0xff] }
  0x2c   :  { %357 = vmatpush.msrb.mxu1 %v238_v10  ;;  %389 = vmatpush.msra.mxu3 %v318_v11  ;;  %v264_v16 = vld [vmem:[%s1467_s3 + $0x230] sm:$0xff]  ;;  %v198_v17 = vld [vmem:[%s1467_s3 + $0x20] sm:$0xff]  ;;  %v257_v36 = vld [vmem:[%s1467_s3 + $0x1f8] sm:$0xff] }
  0x2d   :  { %379 = vmatpush.msrb.mxu2 %v266_v12  ;;  %340 = vmatpush.msra.mxu0 %v200_v13  ;;  %v234_v18 = vld [vmem:[%s1467_s3 + $0x140] sm:$0xff]  ;;  %v196_v21 = vld [vmem:[%s1467_s3 + $0x10] sm:$0xff]  ;;  %v287_v37 = vld [vmem:[%s1467_s3 + $0x2e8] sm:$0xff] }
  0x2e   :  { %v314_v19 = vld [vmem:[%s1467_s3 + $0x3c0] sm:$0xff]  ;;  %358 = vmatpush.msrb.mxu1 %v236_v14  ;;  %390 = vmatpush.msra.mxu3 %v316_v15  ;;  %v232_v22 = vld [vmem:[%s1467_s3 + $0x130] sm:$0xff]  ;;  %v221_v39 = vld [vmem:[%s1467_s3 + $0xd8] sm:$0xff] }
  0x2f   :  { %v262_v20 = vld [vmem:[%s1467_s3 + $0x220] sm:$0xff]  ;;  %380 = vmatpush.msrb.mxu2 %v264_v16  ;;  %341 = vmatpush.msra.mxu0 %v198_v17  ;;  %v312_v23 = vld [vmem:[%s1467_s3 + $0x3b0] sm:$0xff]  ;;  %v255_v40 = vld [vmem:[%s1467_s3 + $0x1e8] sm:$0xff] }
  0x30   :  { %359 = vmatpush.msrb.mxu1 %v234_v18  ;;  %391 = vmatpush.msra.mxu3 %v314_v19  ;;  %v260_v24 = vld [vmem:[%s1467_s3 + $0x210] sm:$0xff]  ;;  %v194_v25 = vld [vmem:[%s1467_s3] sm:$0xff]  ;;  %v285_v41 = vld [vmem:[%s1467_s3 + $0x2d8] sm:$0xff] }
  0x31   :  { %381 = vmatpush.msrb.mxu2 %v262_v20  ;;  %342 = vmatpush.msra.mxu0 %v196_v21  ;;  %v230_v26 = vld [vmem:[%s1467_s3 + $0x120] sm:$0xff]  ;;  %v228_v30 = vld [vmem:[%s1467_s3 + $0x110] sm:$0xff]  ;;  %v219_v43 = vld [vmem:[%s1467_s3 + $0xc8] sm:$0xff] }
  0x32   :  { %v310_v27 = vld [vmem:[%s1467_s3 + $0x3a0] sm:$0xff]  ;;  %360 = vmatpush.msrb.mxu1 %v232_v22  ;;  %392 = vmatpush.msra.mxu3 %v312_v23  ;;  %v308_v31 = vld [vmem:[%s1467_s3 + $0x390] sm:$0xff]  ;;  %v253_v44 = vld [vmem:[%s1467_s3 + $0x1d8] sm:$0xff] }
  0x33   :  { %v258_v28 = vld [vmem:[%s1467_s3 + $0x200] sm:$0xff]  ;;  %382 = vmatpush.msrb.mxu2 %v260_v24  ;;  %343 = vmatpush.msra.mxu0 %v194_v25  ;;  %v304_v38 = vld [vmem:[%s1467_s3 + $0x370] sm:$0xff]  ;;  %v283_v45 = vld [vmem:[%s1467_s3 + $0x2c8] sm:$0xff] }
  0x34   :  { %361 = vmatpush.msrb.mxu1 %v230_v26  ;;  %393 = vmatpush.msra.mxu3 %v310_v27  ;;  %v226_v34 = vld [vmem:[%s1467_s3 + $0x100] sm:$0xff]  ;;  %v300_v46 = vld [vmem:[%s1467_s3 + $0x350] sm:$0xff]  ;;  %v217_v47 = vld [vmem:[%s1467_s3 + $0xb8] sm:$0xff] }
  0x35   :  { %383 = vmatpush.msrb.mxu2 %v258_v28  ;;  %408 = vmatpush.msrb.mxu0 %v225_v29  ;;  %v306_v35 = vld [vmem:[%s1467_s3 + $0x380] sm:$0xff]  ;;  %v251_v48 = vld [vmem:[%s1467_s3 + $0x1c8] sm:$0xff]  ;;  %v281_v49 = vld [vmem:[%s1467_s3 + $0x2b8] sm:$0xff] }
  0x36   :  { %362 = vmatpush.msrb.mxu1 %v228_v30  ;;  %394 = vmatpush.msra.mxu3 %v308_v31  ;;  %v302_v42 = vld [vmem:[%s1467_s3 + $0x360] sm:$0xff]  ;;  %v215_v51 = vld [vmem:[%s1467_s3 + $0xa8] sm:$0xff]  ;;  %v249_v52 = vld [vmem:[%s1467_s3 + $0x1b8] sm:$0xff] }
  0x37   :  { %448 = vmatpush.msra.mxu2 %v289_v32  ;;  %409 = vmatpush.msrb.mxu0 %v223_v33  ;;  %v298_v50 = vld [vmem:[%s1467_s3 + $0x340] sm:$0xff]  ;;  %v279_v53 = vld [vmem:[%s1467_s3 + $0x2a8] sm:$0xff]  ;;  %v296_v54 = vld [vmem:[%s1467_s3 + $0x330] sm:$0xff] }
  0x38   :  { %363 = vmatpush.msrb.mxu1 %v226_v34  ;;  %395 = vmatpush.msra.mxu3 %v306_v35  ;;  %v213_v55 = vld [vmem:[%s1467_s3 + $0x98] sm:$0xff]  ;;  %v247_v56 = vld [vmem:[%s1467_s3 + $0x1a8] sm:$0xff]  ;;  %v294_v58 = vld [vmem:[%s1467_s3 + $0x320] sm:$0xff] }
  0x39   :  { %449 = vmatpush.msra.mxu2 %v287_v37  ;;  %410 = vmatpush.msrb.mxu0 %v221_v39  ;;  %v277_v57 = vld [vmem:[%s1467_s3 + $0x298] sm:$0xff]  ;;  %v211_v59 = vld [vmem:[%s1467_s3 + $0x88] sm:$0xff]  ;;  %v292_v62 = vld [vmem:[%s1467_s3 + $0x310] sm:$0xff] }
  0x3a   :  { %428 = vmatpush.msra.mxu1 %v257_v36  ;;  %396 = vmatpush.msra.mxu3 %v304_v38  ;;  %v245_v60 = vld [vmem:[%s1467_s3 + $0x198] sm:$0xff]  ;;  %v275_v61 = vld [vmem:[%s1467_s3 + $0x288] sm:$0xff]  ;;  %v290_v2 = vld [vmem:[%s1467_s3 + $0x300] sm:$0xff] }
  0x3b   :  { %450 = vmatpush.msra.mxu2 %v285_v41  ;;  %411 = vmatpush.msrb.mxu0 %v219_v43  ;;  %v209_v63 = vld [vmem:[%s1467_s3 + $0x78] sm:$0xff]  ;;  %v243_v0 = vld [vmem:[%s1467_s3 + $0x188] sm:$0xff]  ;;  %v80_v33 = vld [vmem:[%s1466_s2] sm:$0xf] }
  0x3c   :  { %429 = vmatpush.msra.mxu1 %v255_v40  ;;  %397 = vmatpush.msra.mxu3 %v302_v42  ;;  %v273_v1 = vld [vmem:[%s1467_s3 + $0x278] sm:$0xff]  ;;  %v207_v3 = vld [vmem:[%s1467_s3 + $0x68] sm:$0xff]  ;;  %v83_v34 = vperm.slane %v80_v33, 1  ;;  %v82_v36 = vperm.slane %v80_v33, 0  ;;  %v84_v37 = vperm.slane %v80_v33, 2 }
  0x3d   :  { %451 = vmatpush.msra.mxu2 %v283_v45  ;;  %412 = vmatpush.msrb.mxu0 %v217_v47  ;;  %v241_v4 = vld [vmem:[%s1467_s3 + $0x178] sm:$0xff]  ;;  %v271_v5 = vld [vmem:[%s1467_s3 + $0x268] sm:$0xff] }
  0x3e   :  { %430 = vmatpush.msra.mxu1 %v253_v44  ;;  %398 = vmatpush.msra.mxu3 %v300_v46  ;;  %v321_v6 = vld [vmem:[%s1467_s3 + $0x3f8] sm:$0xff]  ;;  %v239_v8 = vld [vmem:[%s1467_s3 + $0x168] sm:$0xff] }
  0x3f   :  { %452 = vmatpush.msra.mxu2 %v281_v49  ;;  %413 = vmatpush.msrb.mxu0 %v215_v51  ;;  %v205_v7 = vld [vmem:[%s1467_s3 + $0x58] sm:$0xff]  ;;  %v319_v10 = vld [vmem:[%s1467_s3 + $0x3e8] sm:$0xff] }
  0x40   :  { %431 = vmatpush.msra.mxu1 %v251_v48  ;;  %399 = vmatpush.msra.mxu3 %v298_v50  ;;  %v269_v9 = vld [vmem:[%s1467_s3 + $0x258] sm:$0xff]  ;;  %v203_v11 = vld [vmem:[%s1467_s3 + $0x48] sm:$0xff] }
  0x41   :  { %453 = vmatpush.msra.mxu2 %v279_v53  ;;  %414 = vmatpush.msrb.mxu0 %v213_v55  ;;  %v237_v12 = vld [vmem:[%s1467_s3 + $0x158] sm:$0xff]  ;;  %v267_v13 = vld [vmem:[%s1467_s3 + $0x248] sm:$0xff] }
  0x42   :  { %432 = vmatpush.msra.mxu1 %v249_v52  ;;  %400 = vmatpush.msra.mxu3 %v296_v54  ;;  %v317_v14 = vld [vmem:[%s1467_s3 + $0x3d8] sm:$0xff]  ;;  %v235_v16 = vld [vmem:[%s1467_s3 + $0x148] sm:$0xff] }
  0x43   :  { %454 = vmatpush.msra.mxu2 %v277_v57  ;;  %415 = vmatpush.msrb.mxu0 %v211_v59  ;;  %v201_v15 = vld [vmem:[%s1467_s3 + $0x38] sm:$0xff]  ;;  %v315_v18 = vld [vmem:[%s1467_s3 + $0x3c8] sm:$0xff] }
  0x44   :  { %433 = vmatpush.msra.mxu1 %v247_v56  ;;  %401 = vmatpush.msra.mxu3 %v294_v58  ;;  %v265_v17 = vld [vmem:[%s1467_s3 + $0x238] sm:$0xff]  ;;  %v199_v19 = vld [vmem:[%s1467_s3 + $0x28] sm:$0xff] }
  0x45   :  { %455 = vmatpush.msra.mxu2 %v275_v61  ;;  %416 = vmatpush.msrb.mxu0 %v209_v63  ;;  %v233_v20 = vld [vmem:[%s1467_s3 + $0x138] sm:$0xff]  ;;  %v263_v21 = vld [vmem:[%s1467_s3 + $0x228] sm:$0xff]  ;;  %v85_v63 = vperm.slane %v80_v33, 3 }
  0x46   :  { %434 = vmatpush.msra.mxu1 %v245_v60  ;;  %402 = vmatpush.msra.mxu3 %v292_v62  ;;  %v313_v22 = vld [vmem:[%s1467_s3 + $0x3b8] sm:$0xff]  ;;  %v231_v24 = vld [vmem:[%s1467_s3 + $0x128] sm:$0xff] }
  0x47   :  { %456 = vmatpush.msra.mxu2 %v273_v1  ;;  %417 = vmatpush.msrb.mxu0 %v207_v3  ;;  %v197_v23 = vld [vmem:[%s1467_s3 + $0x18] sm:$0xff]  ;;  %v311_v26 = vld [vmem:[%s1467_s3 + $0x3a8] sm:$0xff] }
  0x48   :  { %435 = vmatpush.msra.mxu1 %v243_v0  ;;  %403 = vmatpush.msra.mxu3 %v290_v2  ;;  %v261_v25 = vld [vmem:[%s1467_s3 + $0x218] sm:$0xff]  ;;  %v195_v27 = vld [vmem:[%s1467_s3 + $0x8] sm:$0xff] }
  0x49   :  { %457 = vmatpush.msra.mxu2 %v271_v5  ;;  %418 = vmatpush.msrb.mxu0 %v205_v7  ;;  %v229_v28 = vld [vmem:[%s1467_s3 + $0x118] sm:$0xff]  ;;  %v259_v29 = vld [vmem:[%s1467_s3 + $0x208] sm:$0xff]  ;;  %v512_v7 = vld [vmem:[%s1469_s5 + $0x70] sm:$0xff] }
  0x4a   :  { %436 = vmatpush.msra.mxu1 %v241_v4  ;;  %468 = vmatpush.msrb.mxu3 %v321_v6  ;;  %v309_v30 = vld [vmem:[%s1467_s3 + $0x398] sm:$0xff]  ;;  %v227_v31 = vld [vmem:[%s1467_s3 + $0x108] sm:$0xff] }
  0x4b   :  { %458 = vmatpush.msra.mxu2 %v269_v9  ;;  %419 = vmatpush.msrb.mxu0 %v203_v11  ;;  %v307_v32 = vld [vmem:[%s1467_s3 + $0x388] sm:$0xff]  ;;  %v305_v35 = vld [vmem:[%s1467_s3 + $0x378] sm:$0xff]  ;;  %v510_v9 = vld [vmem:[%s1469_s5 + $0x60] sm:$0xff] }
  0x4c   :  { %437 = vmatpush.msra.mxu1 %v239_v8  ;;  %469 = vmatpush.msrb.mxu3 %v319_v10  ;;  %v303_v38 = vld [vmem:[%s1467_s3 + $0x368] sm:$0xff]  ;;  %v301_v41 = vld [vmem:[%s1467_s3 + $0x358] sm:$0xff]  ;;  %v508_v11 = vld [vmem:[%s1469_s5 + $0x50] sm:$0xff] }
  0x4d   :  { %459 = vmatpush.msra.mxu2 %v267_v13  ;;  %420 = vmatpush.msrb.mxu0 %v201_v15  ;;  %v299_v44 = vld [vmem:[%s1467_s3 + $0x348] sm:$0xff]  ;;  %v297_v50 = vld [vmem:[%s1467_s3 + $0x338] sm:$0xff]  ;;  %v506_v13 = vld [vmem:[%s1469_s5 + $0x40] sm:$0xff] }
  0x4e   :  { %438 = vmatpush.msra.mxu1 %v237_v12  ;;  %470 = vmatpush.msrb.mxu3 %v317_v14  ;;  %v295_v51 = vld [vmem:[%s1467_s3 + $0x328] sm:$0xff]  ;;  %v293_v52 = vld [vmem:[%s1467_s3 + $0x318] sm:$0xff] }
  0x4f   :  { %460 = vmatpush.msra.mxu2 %v265_v17  ;;  %421 = vmatpush.msrb.mxu0 %v199_v19  ;;  %v291_v53 = vld [vmem:[%s1467_s3 + $0x308] sm:$0xff]  ;;  %v513_v6 = vld [vmem:[%s1469_s5 + $0x78] sm:$0xff]  ;;  %v524_v17 = vld [vmem:[%s1469_s5 + $0xd0] sm:$0xff] }
  0x50   :  { %439 = vmatpush.msra.mxu1 %v235_v16  ;;  %471 = vmatpush.msrb.mxu3 %v315_v18  ;;  %v511_v8 = vld [vmem:[%s1469_s5 + $0x68] sm:$0xff]  ;;  %v509_v10 = vld [vmem:[%s1469_s5 + $0x58] sm:$0xff]  ;;  %v504_v16 = vld [vmem:[%s1469_s5 + $0x30] sm:$0xff] }
  0x51   :  { %461 = vmatpush.msra.mxu2 %v263_v21  ;;  %422 = vmatpush.msrb.mxu0 %v197_v23  ;;  %v507_v12 = vld [vmem:[%s1469_s5 + $0x48] sm:$0xff]  ;;  %v505_v14 = vld [vmem:[%s1469_s5 + $0x38] sm:$0xff]  ;;  %v522_v21 = vld [vmem:[%s1469_s5 + $0xc0] sm:$0xff] }
  0x52   :  { %440 = vmatpush.msra.mxu1 %v233_v20  ;;  %472 = vmatpush.msrb.mxu3 %v313_v22  ;;  %v525_v15 = vld [vmem:[%s1469_s5 + $0xd8] sm:$0xff]  ;;  %v503_v18 = vld [vmem:[%s1469_s5 + $0x28] sm:$0xff]  ;;  %v502_v20 = vld [vmem:[%s1469_s5 + $0x20] sm:$0xff] }
  0x53   :  { %462 = vmatpush.msra.mxu2 %v261_v25  ;;  %423 = vmatpush.msrb.mxu0 %v195_v27  ;;  %v523_v19 = vld [vmem:[%s1469_s5 + $0xc8] sm:$0xff]  ;;  %v501_v22 = vld [vmem:[%s1469_s5 + $0x18] sm:$0xff]  ;;  %v520_v25 = vld [vmem:[%s1469_s5 + $0xb0] sm:$0xff] }
  0x54   :  { %441 = vmatpush.msra.mxu1 %v231_v24  ;;  %473 = vmatpush.msrb.mxu3 %v311_v26  ;;  %v521_v23 = vld [vmem:[%s1469_s5 + $0xb8] sm:$0xff]  ;;  %v500_v24 = vld [vmem:[%s1469_s5 + $0x10] sm:$0xff]  ;;  %v499_v26 = vld [vmem:[%s1469_s5 + $0x8] sm:$0xff] }
  0x55   :  { %463 = vmatpush.msra.mxu2 %v259_v29  ;;  %v519_v27 = vld [vmem:[%s1469_s5 + $0xa8] sm:$0xff]  ;;  %v518_v29 = vld [vmem:[%s1469_s5 + $0xa0] sm:$0xff] }
  0x56   :  { %442 = vmatpush.msra.mxu1 %v229_v28  ;;  %474 = vmatpush.msrb.mxu3 %v309_v30  ;;  %v498_v28 = vld [vmem:[%s1469_s5] sm:$0xff]  ;;  %v517_v30 = vld [vmem:[%s1469_s5 + $0x98] sm:$0xff]  ;;  %v515_v33 = vld [vmem:[%s1469_s5 + $0x88] sm:$0xff] }
  0x58   :  { %443 = vmatpush.msra.mxu1 %v227_v31  ;;  %475 = vmatpush.msrb.mxu3 %v307_v32  ;;  %v516_v31 = vld [vmem:[%s1469_s5 + $0x90] sm:$0xff]  ;;  %v322_v32 = vld [vmem:[%s1468_s4] sm:$0x3] }
  0x5a   :  { %476 = vmatpush.msrb.mxu3 %v305_v35  ;;  %v324_v35 = vperm.slane %v322_v32, 0 }
  0x5c   :  { %477 = vmatpush.msrb.mxu3 %v303_v38 }
  0x5e   :  { %478 = vmatpush.msrb.mxu3 %v301_v41  ;;  %v325_v41 = vperm.slane %v322_v32, 1 }
  0x60   :  { %479 = vmatpush.msrb.mxu3 %v299_v44 }
  0x62   :  { %480 = vmatpush.msrb.mxu3 %v297_v50 }
  0x64   :  { %481 = vmatpush.msrb.mxu3 %v295_v51 }
  0x66   :  { %482 = vmatpush.msrb.mxu3 %v293_v52 }
  0x68   :  { %483 = vmatpush.msrb.mxu3 %v291_v53 }
  0x95   :  { %v131_v39 = vpop.f32.mrf.mxu1 }
  0x96   :  { %v132_v40 = vadd.f32 %v131_v39, %v83_v34 }
  0x98   :  { %v111_v42 = vpop.f32.mrf.mxu3  ;;  %v151_v43 = vpop.f32.mrf.mxu2  ;;  %v180_v47 = vmul.f32 1.442695, %v132_v40  ;;  %vm175_vm1 = vcmp.gt.f32.partialorder %v132_v40, 0.0 }
  0x99   :  { %v112_v45 = vadd.f32 %v111_v42, %v82_v36  ;;  %v152_v46 = vadd.f32 %v151_v43, %v84_v37  ;;  %v514_v36 = vld [vmem:[%s1469_s5 + $0x80] sm:$0xff] }
  0x9a   :  { %692 = vpow2.f32 %v180_v47 }
  0x9b   :  { %v178_v48 = vmul.f32 1.442695, %v112_v45  ;;  %v182_v49 = vmul.f32 1.442695, %v152_v46  ;;  %vm174_vm2 = vcmp.gt.f32.partialorder %v112_v45, 0.0  ;;  %vm176_vm3 = vcmp.gt.f32.partialorder %v152_v46, 0.0 }
  0x9d   :  { %694 = vpow2.f32 %v178_v48 }
  0x9e   :  { %696 = vpow2.f32 %v182_v49 }
  0xa0   :  { %v693_v54 = vpop.eup %692 }
  0xa1   :  { %v678_v55 = vadd.f32 -1.0, %v693_v54 }
  0xa3   :  { %v695_v56 = vpop.eup %694  ;;  %v191_v59 = vsel %vm175_vm1, %v132_v40, %v678_v55 }
  0xa4   :  { %v697_v57 = vpop.eup %696  ;;  %v677_v58 = vadd.f32 -1.0, %v695_v56  ;;  %364 = vmatmul.f32.vlgmr.msrb.gmra.mxu1 %v191_v59 }
  0xa5   :  { %v679_v60 = vadd.f32 -1.0, %v697_v57  ;;  %558 = vmatpush.msrb.mxu1 %v525_v15 }
  0xa6   :  { %v190_v61 = vsel %vm174_vm2, %v112_v45, %v677_v58 }
  0xa7   :  { %344 = vmatmul.f32.vlgmr.msra.gmra.mxu0 %v190_v61  ;;  %v192_v62 = vsel %vm176_vm3, %v152_v46, %v679_v60  ;;  %559 = vmatpush.msrb.mxu1 %v524_v17 }
  0xa8   :  { %384 = vmatmul.f32.vlgmr.msrb.gmra.mxu2 %v192_v62  ;;  %534 = vmatpush.msra.mxu0 %v513_v6  ;;  %v581_v6 = vld [vmem:[%s1471_s7 + $0x10] sm:$0xff] }
  0xa9   :  { %560 = vmatpush.msrb.mxu1 %v523_v19  ;;  %v625_v19 = vld [vmem:[%s1473_s9 + $0x10] sm:$0xff] }
  0xaa   :  { %535 = vmatpush.msra.mxu0 %v512_v7  ;;  %v580_v7 = vld [vmem:[%s1471_s7 + $0x8] sm:$0xff] }
  0xab   :  { %561 = vmatpush.msrb.mxu1 %v522_v21  ;;  %v623_v21 = vld [vmem:[%s1473_s9] sm:$0xff] }
  0xac   :  { %v171_v0 = vpop.f32.mrf.mxu3  ;;  %444 = vmatmul.f32.vlgmr.msra.gmra.mxu1 %v191_v59  ;;  %536 = vmatpush.msra.mxu0 %v511_v8  ;;  %v579_v8 = vld [vmem:[%s1471_s7] sm:$0xff] }
  0xad   :  { %v172_v1 = vadd.f32 %v171_v0, %v85_v63  ;;  %562 = vmatpush.msrb.mxu1 %v521_v23  ;;  %v588_v63 = vld [vmem:[%s1471_s7 + $0x48] sm:$0xff]  ;;  %v587_v0 = vld [vmem:[%s1471_s7 + $0x40] sm:$0xff] }
  0xae   :  { %537 = vmatpush.msra.mxu0 %v510_v9  ;;  %v689_v9 = vld [vmem:[%s1470_s6] ss:$0 sm:$0xff] }
  0xaf   :  { %v184_v2 = vmul.f32 1.442695, %v172_v1  ;;  %424 = vmatmul.f32.vlgmr.msrb.gmra.mxu0 %v190_v61  ;;  %vm177_vm4 = vcmp.gt.f32.partialorder %v172_v1, 0.0  ;;  %563 = vmatpush.msrb.mxu1 %v520_v25  ;;  %v590_v61 = vld [vmem:[%s1471_s7 + $0x58] sm:$0xff] }
  0xb0   :  { %464 = vmatmul.f32.vlgmr.msra.gmra.mxu2 %v192_v62  ;;  %538 = vmatpush.msra.mxu0 %v509_v10  ;;  %v589_v62 = vld [vmem:[%s1471_s7 + $0x50] sm:$0xff] }
  0xb1   :  { %698 = vpow2.f32 %v184_v2  ;;  %564 = vmatpush.msrb.mxu1 %v519_v27  ;;  %602 = vmatpush.msrb.mxu2 %v590_v61  ;;  %v585_v2 = vld [vmem:[%s1471_s7 + $0x30] sm:$0xff] }
  0xb2   :  { %539 = vmatpush.msra.mxu0 %v508_v11 }
  0xb3   :  { %565 = vmatpush.msrb.mxu1 %v518_v29  ;;  %603 = vmatpush.msrb.mxu2 %v589_v62  ;;  %v691_v29 = vld [vmem:[%s1474_s10] ss:$0 sm:$0xff] }
  0xb4   :  { %540 = vmatpush.msra.mxu0 %v507_v12 }
  0xb5   :  { %566 = vmatpush.msrb.mxu1 %v517_v30  ;;  %604 = vmatpush.msrb.mxu2 %v588_v63 }
  0xb6   :  { %541 = vmatpush.msra.mxu0 %v506_v13 }
  0xb7   :  { %v699_v3 = vpop.eup %698  ;;  %567 = vmatpush.msrb.mxu1 %v516_v31  ;;  %605 = vmatpush.msrb.mxu2 %v587_v0 }
  0xb8   :  { %v680_v4 = vadd.f32 -1.0, %v699_v3  ;;  %542 = vmatpush.msra.mxu0 %v505_v14  ;;  %v584_v3 = vld [vmem:[%s1471_s7 + $0x28] sm:$0xff] }
  0xb9   :  { %568 = vmatpush.msrb.mxu1 %v515_v33 }
  0xba   :  { %v193_v5 = vsel %vm177_vm4, %v172_v1, %v680_v4  ;;  %543 = vmatpush.msra.mxu0 %v504_v16  ;;  %v586_v1 = vld [vmem:[%s1471_s7 + $0x38] sm:$0xff]  ;;  %v583_v4 = vld [vmem:[%s1471_s7 + $0x20] sm:$0xff] }
  0xbb   :  { %404 = vmatmul.f32.vlgmr.msra.gmra.mxu3 %v193_v5  ;;  %569 = vmatpush.msrb.mxu1 %v514_v36 }
  0xbc   :  { %544 = vmatpush.msra.mxu0 %v503_v18  ;;  %606 = vmatpush.msrb.mxu2 %v586_v1  ;;  %v626_v18 = vld [vmem:[%s1473_s9 + $0x18] sm:$0xff] }
  0xbe   :  { %545 = vmatpush.msra.mxu0 %v502_v20  ;;  %607 = vmatpush.msrb.mxu2 %v585_v2  ;;  %v624_v20 = vld [vmem:[%s1473_s9 + $0x8] sm:$0xff]  ;;  %s734_s9 = smov [#allocation2]  }
  0xbf   :  { %s662_s27 = sshll.u32 %s734_s9, 4  ;;  %s663_s27 = int_to_ptr.vmem [resolvable:$true] %s662_s27 }
  0xc0   :  { %546 = vmatpush.msra.mxu0 %v501_v22  ;;  %608 = vmatpush.msrb.mxu2 %v584_v3  ;;  %v690_v22 = vld [vmem:[%s1472_s8] ss:$0 sm:$0xff]  ;;  %s664_s8 = sshll.u32 %s1475_s11, 4  ;;  %s665_s8 = int_to_ptr.hbm [resolvable:$true] %s664_s8 }
  0xc2   :  { %547 = vmatpush.msra.mxu0 %v500_v24  ;;  %609 = vmatpush.msrb.mxu2 %v583_v4 }
  0xc3   :  { %484 = vmatmul.f32.vlgmr.msrb.gmra.mxu3 %v193_v5  ;;  %v582_v5 = vld [vmem:[%s1471_s7 + $0x18] sm:$0xff] }
  0xc4   :  { %548 = vmatpush.msra.mxu0 %v499_v26  ;;  %610 = vmatpush.msrb.mxu2 %v582_v5 }
  0xc6   :  { %549 = vmatpush.msra.mxu0 %v498_v28  ;;  %611 = vmatpush.msrb.mxu2 %v581_v6 }
  0xc8   :  { %612 = vmatpush.msrb.mxu2 %v580_v7  ;;  %647 = vmatpush.msrb.mxu0 %v626_v18 }
  0xca   :  { %613 = vmatpush.msrb.mxu2 %v579_v8  ;;  %648 = vmatpush.msrb.mxu0 %v625_v19 }
  0xcc   :  { %649 = vmatpush.msrb.mxu0 %v624_v20 }
  0xce   :  { %650 = vmatpush.msrb.mxu0 %v623_v21 }
 0x121   :  { %v365_v37 = vpop.f32.mrf.mxu1 }
 0x124   :  { %v345_v34 = vpop.f32.mrf.mxu0 }
 0x125   :  { %v346_v38 = vadd.f32 %v345_v34, %v324_v35 }
 0x127   :  { %v366_v40 = vadd.f32 %v365_v37, %v346_v38 }
 0x129   :  { %v445_v47 = vpop.f32.mrf.mxu1 }
 0x12b   :  { %v385_v39 = vpop.f32.mrf.mxu2 }
 0x12c   :  { %v425_v42 = vpop.f32.mrf.mxu0  ;;  %v386_v43 = vadd.f32 %v385_v39, %v366_v40 }
 0x12d   :  { %v426_v45 = vadd.f32 %v425_v42, %v325_v41 }
 0x12f   :  { %v446_v50 = vadd.f32 %v445_v47, %v426_v45 }
 0x133   :  { %v465_v49 = vpop.f32.mrf.mxu2 }
 0x134   :  { %v466_v51 = vadd.f32 %v465_v49, %v446_v50 }
 0x13e   :  { %v405_v44 = vpop.f32.mrf.mxu3 }
 0x13f   :  { %v406_v46 = vadd.f32 %v405_v44, %v386_v43 }
 0x141   :  { %v490_v48 = vmul.f32 1.442695, %v406_v46  ;;  %vm488_vm5 = vcmp.gt.f32.partialorder %v406_v46, 0.0 }
 0x143   :  { %700 = vpow2.f32 %v490_v48 }
 0x146   :  { %v485_v52 = vpop.f32.mrf.mxu3 }
 0x147   :  { %v486_v53 = vadd.f32 %v485_v52, %v466_v51 }
 0x149   :  { %v701_v54 = vpop.eup %700  ;;  %v492_v55 = vmul.f32 1.442695, %v486_v53  ;;  %vm489_vm7 = vcmp.gt.f32.partialorder %v486_v53, 0.0 }
 0x14a   :  { %v681_v56 = vadd.f32 -1.0, %v701_v54 }
 0x14b   :  { %702 = vpow2.f32 %v492_v55 }
 0x14c   :  { %v496_v57 = vsel %vm488_vm5, %v406_v46, %v681_v56 }
 0x14d   :  { %550 = vmatmul.f32.vlgmr.msra.gmra.mxu0 %v496_v57 }
 0x151   :  { %v703_v58 = vpop.eup %702 }
 0x152   :  { %v682_v59 = vadd.f32 -1.0, %v703_v58 }
 0x154   :  { %v497_v60 = vsel %vm489_vm7, %v486_v53, %v682_v59 }
 0x155   :  { %683 = vmatmul.msk.f32.vlgmr.msrb.gmra.mxu1 %vm530_vm6, %v497_v60 }
 0x1ca   :  { %v551_v10 = vpop.f32.mrf.mxu0 }
 0x1cb   :  { %v552_v11 = vadd.f32 %v689_v9, %v551_v10 }
 0x1d2   :  { %v571_v12 = vpop.f32.mrf.mxu1 }
 0x1d3   :  { %v572_v13 = vadd.f32 %v571_v12, %v552_v11 }
 0x1d5   :  { %v575_v14 = vmul.f32 1.442695, %v572_v13  ;;  %vm574_vm8 = vcmp.gt.f32.partialorder %v572_v13, 0.0 }
 0x1d7   :  { %704 = vpow2.f32 %v575_v14 }
 0x1dd   :  { %v705_v15 = vpop.eup %704 }
 0x1de   :  { %v684_v16 = vadd.f32 -1.0, %v705_v15 }
 0x1e0   :  { %v578_v17 = vsel %vm574_vm8, %v572_v13, %v684_v16 }
 0x1e1   :  { %685 = vmatmul.msk.f32.vlgmr.msrb.gmra.mxu2 %vm530_vm6, %v578_v17 }
 0x264   :  { %v615_v23 = vpop.f32.mrf.mxu2 }
 0x265   :  { %v616_v24 = vadd.f32 %v690_v22, %v615_v23 }
 0x267   :  { %v619_v25 = vmul.f32 1.442695, %v616_v24  ;;  %vm618_vm10 = vcmp.gt.f32.partialorder %v616_v24, 0.0 }
 0x269   :  { %706 = vpow2.f32 %v619_v25 }
 0x26f   :  { %v707_v26 = vpop.eup %706 }
 0x270   :  { %v686_v27 = vadd.f32 -1.0, %v707_v26 }
 0x272   :  { %v622_v28 = vsel %vm618_vm10, %v616_v24, %v686_v27 }
 0x273   :  { %687 = vmatmul.msk.f32.vlgmr.msrb.gmra.mxu0 %vm631_vm9, %v622_v28 }
 0x2f0   :  { %v652_v30 = vpop.f32.mrf.mxu0 }
 0x2f1   :  { %v653_v31 = vadd.f32 %v691_v29, %v652_v30 }
 0x2f3   :  { %656 = vst.msk [vmem:[#allocation2] sm:$0x3] %vm655_vm11, %v653_v31 }
 0x2f4   :  { %667 = dma.vmem_to_hbm [thread:$0]  %s663_s27, 32, %s665_s8, [#allocation3]  }
 0x2f5   :  { %732 = dma.done.wait [#allocation3], 32  }
 0x2f6   :  { %733 = vsyncadd [#allocation3], 4294967264 }
 0x2f7   :  { %672 = vsyncpa [#allocation3], 1 }

</bundles_post_ra>
